<compile_context>
chip_gen: v6e
topology: v6e:2x2x1
jax: 0.10.0
libtpu: 0.0.40
codegen_flags: <defaults>
</compile_context>

<pallas_src>
import functools

import jax
import jax.numpy as jnp
from jax import lax
from jax.experimental import pallas as pl
from jax.experimental.pallas import tpu as pltpu


def _round_up(x, m):
    return ((x + m - 1) // m) * m


def _use_core_parallel():
    # v7x has 2 TensorCores per chip; only CORE_PARALLEL actually shards a grid
    # axis across them ("parallel" vs "arbitrary" barely changes codegen).
    try:
        kind = jax.devices()[0].device_kind.lower()
    except Exception:
        return False
    return "v7" in kind


def _pinn_kernel(x_ref, w0_ref, b0_ref, wh_ref, bh_ref, wf_ref, bf_ref, o_ref,
                 *, num_hidden, sub_tile, hidden_bf16):
    tile = x_ref.shape[1]
    num_sub = tile // sub_tile

    w0 = w0_ref[...]            # (H, 3)
    b0 = b0_ref[...]            # (H, 1)
    wf = wf_ref[...]            # (3, H)
    bf = bf_ref[...]            # (3, 1)

    def hidden_layer(w, b, h):
        if hidden_bf16:
            w = w.astype(jnp.bfloat16)
            h = h.astype(jnp.bfloat16)
        return jnp.tanh(jnp.dot(w, h, preferred_element_type=jnp.float32) + b)

    # Inner sub-tile loop: run the whole layer stack on `sub_tile` batch columns
    # at a time so the live activation stays small (H x sub_tile f32), while the
    # outer grid block stays large enough to amortize grid-step overhead.
    for s in range(num_sub):
        col = s * sub_tile                        # static, 128-aligned
        xs = x_ref[:, col:col + sub_tile]         # (3, sub)

        # First layer: K=3 contraction as 3 VPU broadcast FMAs (skip the MXU).
        pre = (w0[:, 0:1] * xs[0:1, :]
               + w0[:, 1:2] * xs[1:2, :]
               + w0[:, 2:3] * xs[2:3, :]
               + b0)                              # (H, sub)
        h = jnp.tanh(pre)

        if num_hidden >= 8:
            # Deep nets: bound live ranges / code size with a fori_loop over the
            # stacked hidden weights instead of a static unroll.
            h = lax.fori_loop(
                0, num_hidden,
                lambda l, hh: hidden_layer(wh_ref[l], bh_ref[l], hh),
                h)
        else:
            for layer in range(num_hidden):
                h = hidden_layer(wh_ref[layer], bh_ref[layer], h)

        # Final layer, no activation: (3, H) @ (H, sub) + (3, 1).
        out = jnp.dot(wf, h, preferred_element_type=jnp.float32) + bf
        o_ref[:, col:col + sub_tile] = out.astype(o_ref.dtype)


def pinns_forward(x, params, *, tile_n=2048, sub_tile=None, feature_major=False,
                  hidden_bf16=None):
    """Fused PINNs forward.

    x: (N, 3) float32 (row-major, like the PyTorch module), or (3, N) when
       feature_major=True (skips the wrapper-side transposes).
    params: PyTorch-layout weights (see init_params). Returns (N, 3) or (3, N).
    """
    w0, b0, wh, bh, wf, bf = (params["w0"], params["b0"], params["wh"],
                              params["bh"], params["wf"], params["bf"])
    H = w0.shape[0]
    num_hidden = wh.shape[0]
    N = x.shape[1] if feature_major else x.shape[0]

    if hidden_bf16 is None:
        # bf16 MXU path only pays off once the HxH contraction is large
        # (v6e/v7x MXUs are bf16-native); keep f32 at small H for accuracy.
        hidden_bf16 = H >= 128

    # Keep a non-empty stack so BlockSpecs stay well-formed when nb_layers == 1.
    if num_hidden == 0:
        wh = jnp.zeros((1, H, H), w0.dtype)
        bh = jnp.zeros((1, H, 1), w0.dtype)
    n_stack = wh.shape[0]

    # --- Tiling ------------------------------------------------------------
    # Large batch tile (amortize ~0.35 us/step), inner sub-tile keeps the live
    # activation around H * sub * 4B ~ 64 KiB (~16 vregs at H=32).
    if sub_tile is None:
        sub_tile = max(128, ((16384 // max(H, 1)) // 128) * 128)
    tile = _round_up(max(128, min(tile_n, _round_up(N, 128))), 128)
    sub = _round_up(max(128, min(sub_tile, tile)), 128)
    tile = _round_up(tile, sub)

    core_parallel = _use_core_parallel()
    n_pad = _round_up(N, tile)
    grid = n_pad // tile
    if core_parallel and grid % 2 == 1:
        grid += 1                 # keep the grid even so both v7x TCs get work
        n_pad = grid * tile

    # Feature-major, zero-padded input: (3, n_pad).
    if feature_major:
        x_t = jnp.pad(x, ((0, 0), (0, n_pad - N)))
    else:
        # TODO(synk): callers that can produce/consume feature-major (3, N)
        # buffers should pass feature_major=True to drop these two XLA
        # transposes (extra HBM read+write; matters most on v5e).
        x_t = jnp.pad(x.T, ((0, 0), (0, n_pad - N)))

    kernel = functools.partial(_pinn_kernel, num_hidden=num_hidden,
                               sub_tile=sub, hidden_bf16=hidden_bf16)

    # Weights/biases: constant index map + single-buffered (fetched once).
    def _const_spec(shape):
        nd = len(shape)
        return pl.BlockSpec(shape, lambda i: (0,) * nd,
                            pipeline_mode=pl.Buffered(1))

    weight_bytes = sum(int(a.size) * a.dtype.itemsize
                       for a in (w0, b0, wh, bh, wf, bf))
    io_block_bytes = 2 * 2 * 3 * tile * x_t.dtype.itemsize   # x + out, 2 bufs
    # Explicit scoped-VMEM limit: >= 32 MiB (v5e default is only 16 MiB) but
    # capped well under v7x's 64 MiB physical VMEM.
    vmem_limit = min(48 << 20,
                     max(32 << 20, int(1.5 * (weight_bytes + io_block_bytes))))

    flops = 2 * n_pad * (3 * H + num_hidden * H * H + H * 3)
    transcendentals = n_pad * H * (num_hidden + 1)
    bytes_accessed = (x_t.size * x_t.dtype.itemsize
                      + 3 * n_pad * x_t.dtype.itemsize
                      + weight_bytes)

    out_t = pl.pallas_call(
        kernel,
        out_shape=jax.ShapeDtypeStruct((3, n_pad), x.dtype),
        grid_spec=pltpu.PrefetchScalarGridSpec(
            num_scalar_prefetch=0,
            grid=(grid,),
            in_specs=[
                pl.BlockSpec((3, tile), lambda i: (0, i)),     # x (lane-dense)
                _const_spec((H, 3)),                           # w0
                _const_spec((H, 1)),                           # b0
                _const_spec((n_stack, H, H)),                  # hidden W stack
                _const_spec((n_stack, H, 1)),                  # hidden b stack
                _const_spec((3, H)),                           # wf
                _const_spec((3, 1)),                           # bf
            ],
            out_specs=pl.BlockSpec((3, tile), lambda i: (0, i)),  # lane-dense
        ),
        compiler_params=pltpu.CompilerParams(
            dimension_semantics=(
                pltpu.CORE_PARALLEL if core_parallel else pltpu.PARALLEL,),
            vmem_limit_bytes=vmem_limit),
        cost_estimate=pl.CostEstimate(
            flops=int(flops),
            transcendentals=int(transcendentals),
            bytes_accessed=int(bytes_accessed)),
    )(x_t, w0, b0, wh, bh, wf, bf)

    out = out_t[:, :N]
    return out if feature_major else out.T


def xavier_uniform(key, out_features, in_features, dtype=jnp.float32):
    # Matches torch.nn.init.xavier_uniform_ on a (out, in) weight (gain=1).
    limit = (6.0 / (in_features + out_features)) ** 0.5
    return jax.random.uniform(key, (out_features, in_features), dtype, -limit, limit)


def init_params(key, nb_neurons, nb_layers):
    H = nb_neurons
    num_hidden = nb_layers - 1
    keys = jax.random.split(key, num_hidden + 2)
    w0 = xavier_uniform(keys[0], H, 3)
    if num_hidden > 0:
        wh = jnp.stack([xavier_uniform(keys[1 + l], H, H) for l in range(num_hidden)])
        bh = jnp.zeros((num_hidden, H, 1), jnp.float32)
    else:
        wh = jnp.zeros((0, H, H), jnp.float32)
        bh = jnp.zeros((0, H, 1), jnp.float32)
    wf = xavier_uniform(keys[-1], 3, H)
    return dict(
        w0=w0, b0=jnp.zeros((H, 1), jnp.float32),
        wh=wh, bh=bh,
        wf=wf, bf=jnp.zeros((3, 1), jnp.float32),
    )


def reference_forward(x, params):
    # Pure-JAX reference, row-major like the PyTorch module.
    h = jnp.tanh(x @ params["w0"].T + params["b0"][:, 0])
    for l in range(params["wh"].shape[0]):
        h = jnp.tanh(h @ params["wh"][l].T + params["bh"][l, :, 0])
    return h @ params["wf"].T + params["bf"][:, 0]


if __name__ == "__main__":
    hyper_param = {"nb_neurons": 32, "nb_layers": 3}  # 1 init + 2 hidden + 1 final
    N = 200  # deliberately NOT a multiple of the tile -> exercises padding path

    key = jax.random.PRNGKey(0)
    k_param, k_x = jax.random.split(key)
    params = init_params(k_param, hyper_param["nb_neurons"], hyper_param["nb_layers"])
    x = jax.random.normal(k_x, (N, 3), jnp.float32)

    ref = reference_forward(x, params)

    # Run 1: default (large-tile) configuration.
    out = jax.block_until_ready(pinns_forward(x, params))
    assert out.shape == (N, 3)
    assert jnp.allclose(out, ref, atol=1e-5, rtol=1e-5), \
        float(jnp.max(jnp.abs(out - ref)))

    # Run 2: small tile forces a multi-step grid + padded final block.
    out2 = jax.block_until_ready(pinns_forward(x, params, tile_n=128, sub_tile=128))
    assert jnp.allclose(out2, ref, atol=1e-5, rtol=1e-5), \
        float(jnp.max(jnp.abs(out2 - ref)))

    print("KERNEL_OK")
</pallas_src>

<mosaic_0001>
module attributes {stable_mosaic.version = 11 : i64} {
  func.func @_pinn_kernel(%arg0: i32, %arg1: memref<3x256xf32, #tpu.memory_space<vmem>>, %arg2: memref<32x3xf32, #tpu.memory_space<vmem>>, %arg3: memref<32x1xf32, #tpu.memory_space<vmem>>, %arg4: memref<2x32x32xf32, #tpu.memory_space<vmem>>, %arg5: memref<2x32x1xf32, #tpu.memory_space<vmem>>, %arg6: memref<3x32xf32, #tpu.memory_space<vmem>>, %arg7: memref<3x1xf32, #tpu.memory_space<vmem>>, %arg8: memref<3x256xf32, #tpu.memory_space<vmem>>) attributes {dimension_semantics = [#tpu.dimension_semantics<parallel>], iteration_bounds = array<i64: 1>, scalar_prefetch = 0 : i64, scratch_operands = 0 : i64, tpu.core_type = #tpu.core_type<tc>, window_params = [{transform_indices = @transform_0, window_bounds = array<i64: 3, 256>}, {pipeline_mode = #tpu.pipeline_mode<synchronous>, transform_indices = @transform_1, window_bounds = array<i64: 32, 3>}, {pipeline_mode = #tpu.pipeline_mode<synchronous>, transform_indices = @transform_2, window_bounds = array<i64: 32, 1>}, {pipeline_mode = #tpu.pipeline_mode<synchronous>, transform_indices = @transform_3, window_bounds = array<i64: 2, 32, 32>}, {pipeline_mode = #tpu.pipeline_mode<synchronous>, transform_indices = @transform_4, window_bounds = array<i64: 2, 32, 1>}, {pipeline_mode = #tpu.pipeline_mode<synchronous>, transform_indices = @transform_5, window_bounds = array<i64: 3, 32>}, {pipeline_mode = #tpu.pipeline_mode<synchronous>, transform_indices = @transform_6, window_bounds = array<i64: 3, 1>}, {transform_indices = @transform_7, window_bounds = array<i64: 3, 256>}]} {
    %c0 = arith.constant 0 : index
    %c0_0 = arith.constant 0 : index
    %0 = vector.load %arg2[%c0, %c0_0] : memref<32x3xf32, #tpu.memory_space<vmem>>, vector<32x3xf32>
    %c0_1 = arith.constant 0 : index
    %c0_2 = arith.constant 0 : index
    %1 = vector.load %arg3[%c0_1, %c0_2] : memref<32x1xf32, #tpu.memory_space<vmem>>, vector<32x1xf32>
    %c0_3 = arith.constant 0 : index
    %c0_4 = arith.constant 0 : index
    %2 = vector.load %arg6[%c0_3, %c0_4] : memref<3x32xf32, #tpu.memory_space<vmem>>, vector<3x32xf32>
    %c0_5 = arith.constant 0 : index
    %c0_6 = arith.constant 0 : index
    %3 = vector.load %arg7[%c0_5, %c0_6] : memref<3x1xf32, #tpu.memory_space<vmem>>, vector<3x1xf32>
    %c0_7 = arith.constant 0 : index
    %c0_8 = arith.constant 0 : index
    %4 = vector.load %arg1[%c0_7, %c0_8] : memref<3x256xf32, #tpu.memory_space<vmem>>, vector<3x256xf32>
    %5 = vector.extract_strided_slice %0 {offsets = [0, 0], sizes = [32, 1], strides = [1, 1]} : vector<32x3xf32> to vector<32x1xf32>
    %6 = vector.extract_strided_slice %4 {offsets = [0, 0], sizes = [1, 256], strides = [1, 1]} : vector<3x256xf32> to vector<1x256xf32>
    %7 = vector.broadcast %5 : vector<32x1xf32> to vector<32x256xf32>
    %8 = vector.broadcast %6 : vector<1x256xf32> to vector<32x256xf32>
    %9 = arith.mulf %7, %8 : vector<32x256xf32>
    %10 = vector.extract_strided_slice %0 {offsets = [0, 1], sizes = [32, 1], strides = [1, 1]} : vector<32x3xf32> to vector<32x1xf32>
    %11 = vector.extract_strided_slice %4 {offsets = [1, 0], sizes = [1, 256], strides = [1, 1]} : vector<3x256xf32> to vector<1x256xf32>
    %12 = vector.broadcast %10 : vector<32x1xf32> to vector<32x256xf32>
    %13 = vector.broadcast %11 : vector<1x256xf32> to vector<32x256xf32>
    %14 = arith.mulf %12, %13 : vector<32x256xf32>
    %15 = arith.addf %9, %14 : vector<32x256xf32>
    %16 = vector.extract_strided_slice %0 {offsets = [0, 2], sizes = [32, 1], strides = [1, 1]} : vector<32x3xf32> to vector<32x1xf32>
    %17 = vector.extract_strided_slice %4 {offsets = [2, 0], sizes = [1, 256], strides = [1, 1]} : vector<3x256xf32> to vector<1x256xf32>
    %18 = vector.broadcast %16 : vector<32x1xf32> to vector<32x256xf32>
    %19 = vector.broadcast %17 : vector<1x256xf32> to vector<32x256xf32>
    %20 = arith.mulf %18, %19 : vector<32x256xf32>
    %21 = arith.addf %15, %20 : vector<32x256xf32>
    %22 = vector.broadcast %1 : vector<32x1xf32> to vector<32x256xf32>
    %23 = arith.addf %21, %22 : vector<32x256xf32>
    %24 = math.tanh %23 : vector<32x256xf32>
    %c0_9 = arith.constant 0 : index
    %c0_10 = arith.constant 0 : index
    %c0_11 = arith.constant 0 : index
    %25 = vector.load %arg4[%c0_9, %c0_10, %c0_11] : memref<2x32x32xf32, #tpu.memory_space<vmem>>, vector<1x32x32xf32>
    %26 = vector.shape_cast %25 : vector<1x32x32xf32> to vector<32x32xf32>
    %c0_12 = arith.constant 0 : index
    %c0_13 = arith.constant 0 : index
    %c0_14 = arith.constant 0 : index
    %27 = vector.load %arg5[%c0_12, %c0_13, %c0_14] : memref<2x32x1xf32, #tpu.memory_space<vmem>>, vector<1x32x1xf32>
    %28 = vector.shape_cast %27 : vector<1x32x1xf32> to vector<32x1xf32>
    %cst = arith.constant dense<0.000000e+00> : vector<32x256xf32>
    %29 = tpu.matmul %26, %24, %cst {dimension_numbers = #tpu.dot_dimension_numbers<[1], [0], [0], [1], [0, 0, 1, 1], [], []>} : vector<32x32xf32>, vector<32x256xf32>, vector<32x256xf32> -> vector<32x256xf32>
    %30 = vector.broadcast %28 : vector<32x1xf32> to vector<32x256xf32>
    %31 = arith.addf %29, %30 : vector<32x256xf32>
    %32 = math.tanh %31 : vector<32x256xf32>
    %c1 = arith.constant 1 : index
    %c0_15 = arith.constant 0 : index
    %c0_16 = arith.constant 0 : index
    %33 = vector.load %arg4[%c1, %c0_15, %c0_16] : memref<2x32x32xf32, #tpu.memory_space<vmem>>, vector<1x32x32xf32>
    %34 = vector.shape_cast %33 : vector<1x32x32xf32> to vector<32x32xf32>
    %c1_17 = arith.constant 1 : index
    %c0_18 = arith.constant 0 : index
    %c0_19 = arith.constant 0 : index
    %35 = vector.load %arg5[%c1_17, %c0_18, %c0_19] : memref<2x32x1xf32, #tpu.memory_space<vmem>>, vector<1x32x1xf32>
    %36 = vector.shape_cast %35 : vector<1x32x1xf32> to vector<32x1xf32>
    %cst_20 = arith.constant dense<0.000000e+00> : vector<32x256xf32>
    %37 = tpu.matmul %34, %32, %cst_20 {dimension_numbers = #tpu.dot_dimension_numbers<[1], [0], [0], [1], [0, 0, 1, 1], [], []>} : vector<32x32xf32>, vector<32x256xf32>, vector<32x256xf32> -> vector<32x256xf32>
    %38 = vector.broadcast %36 : vector<32x1xf32> to vector<32x256xf32>
    %39 = arith.addf %37, %38 : vector<32x256xf32>
    %40 = math.tanh %39 : vector<32x256xf32>
    %cst_21 = arith.constant dense<0.000000e+00> : vector<3x256xf32>
    %41 = tpu.matmul %2, %40, %cst_21 {dimension_numbers = #tpu.dot_dimension_numbers<[1], [0], [0], [1], [0, 0, 1, 1], [], []>} : vector<3x32xf32>, vector<32x256xf32>, vector<3x256xf32> -> vector<3x256xf32>
    %42 = vector.broadcast %3 : vector<3x1xf32> to vector<3x256xf32>
    %43 = arith.addf %41, %42 : vector<3x256xf32>
    %c0_22 = arith.constant 0 : index
    %c0_23 = arith.constant 0 : index
    %44 = vector.load %arg8[%c0_22, %c0_23] : memref<3x256xf32, #tpu.memory_space<vmem>>, vector<3x256xf32>
    tpu.vector_store %arg8[%c0_22, %c0_23], %43 {strides = array<i32>} : memref<3x256xf32, #tpu.memory_space<vmem>>, vector<3x256xf32>,
    return
  }
  func.func @transform_0(%arg0: i32) -> (i32, i32) {
    %c0_i32 = arith.constant 0 : i32
    %c0_i32_0 = arith.constant 0 : i32
    return %c0_i32, %arg0 : i32, i32
  }
  func.func @transform_1(%arg0: i32) -> (i32, i32) {
    %c0_i32 = arith.constant 0 : i32
    %c0_i32_0 = arith.constant 0 : i32
    %c0_i32_1 = arith.constant 0 : i32
    return %c0_i32, %c0_i32_0 : i32, i32
  }
  func.func @transform_2(%arg0: i32) -> (i32, i32) {
    %c0_i32 = arith.constant 0 : i32
    %c0_i32_0 = arith.constant 0 : i32
    %c0_i32_1 = arith.constant 0 : i32
    return %c0_i32, %c0_i32_0 : i32, i32
  }
  func.func @transform_3(%arg0: i32) -> (i32, i32, i32) {
    %c0_i32 = arith.constant 0 : i32
    %c0_i32_0 = arith.constant 0 : i32
    %c0_i32_1 = arith.constant 0 : i32
    %c0_i32_2 = arith.constant 0 : i32
    return %c0_i32, %c0_i32_0, %c0_i32_1 : i32, i32, i32
  }
  func.func @transform_4(%arg0: i32) -> (i32, i32, i32) {
    %c0_i32 = arith.constant 0 : i32
    %c0_i32_0 = arith.constant 0 : i32
    %c0_i32_1 = arith.constant 0 : i32
    %c0_i32_2 = arith.constant 0 : i32
    return %c0_i32, %c0_i32_0, %c0_i32_1 : i32, i32, i32
  }
  func.func @transform_5(%arg0: i32) -> (i32, i32) {
    %c0_i32 = arith.constant 0 : i32
    %c0_i32_0 = arith.constant 0 : i32
    %c0_i32_1 = arith.constant 0 : i32
    return %c0_i32, %c0_i32_0 : i32, i32
  }
  func.func @transform_6(%arg0: i32) -> (i32, i32) {
    %c0_i32 = arith.constant 0 : i32
    %c0_i32_0 = arith.constant 0 : i32
    %c0_i32_1 = arith.constant 0 : i32
    return %c0_i32, %c0_i32_0 : i32, i32
  }
  func.func @transform_7(%arg0: i32) -> (i32, i32) {
    %c0_i32 = arith.constant 0 : i32
    %c0_i32_0 = arith.constant 0 : i32
    return %c0_i32, %arg0 : i32, i32
  }
}

</mosaic_0001>

<bundles_post_ra>
// kernel: tpu_custom_call.1
= control target key start
LH: loop header
LB: loop body
LE: loop exit
PB: predicated region body
PF: predicated region fallthrough
CT: control target
= control target key end

     0   :  { %v700_v2 = vmov 1   ;;  %v701_v3 = vmov 0   ;;  %v702_v5 = vmov 2   ;;  %s847_s0 = inlined_call_operand.vmem [shape: f32[3,256], index: 0, kind: input, shape index: {}]   ;;  %s848_s1 = inlined_call_operand.vmem [shape: f32[32,3], index: 1, kind: input, shape index: {}]   ;;  %s849_s2 = inlined_call_operand.vmem [shape: f32[32,1], index: 2, kind: input, shape index: {}]   ;;  %s850_s3 = inlined_call_operand.vmem [shape: f32[2,32,32], index: 3, kind: input, shape index: {}]   ;;  %s851_s4 = inlined_call_operand.vmem [shape: f32[2,32,1], index: 4, kind: input, shape index: {}]   ;;  %s852_s5 = inlined_call_operand.vmem [shape: f32[3,32], index: 5, kind: input, shape index: {}]   ;;  %s853_s6 = inlined_call_operand.vmem [shape: f32[3,1], index: 6, kind: input, shape index: {}]   ;;  %s854_s7 = inlined_call_operand.hbm [shape: f32[3,256], index: 7, kind: output, shape index: {}]  }
   0x1   :  { %v30_v0 = vld [vmem:[%s848_s1 + $0x18] sm:$0xff]  ;;  %v29_v1 = vld [vmem:[%s848_s1 + $0x10] sm:$0xff]  ;;  %618 = vset.pattern.permute.xlu0 %v700_v2  ;;  %619 = vset.pattern.permute.xlu1 %v701_v3  ;;  %v28_v4 = vld [vmem:[%s848_s1 + $0x8] sm:$0xff] }
   0x2   :  { %98 = vperm.xlu0 %618, %v30_v0   ;;  %50 = vperm.xlu1 %619, %v29_v1  }
   0x6   :  { %625 = vset.pattern.permute.xlu0 %v702_v5  ;;  %620 = vset.pattern.permute.xlu1 %v700_v2 }
   0x7   :  { %12 = vsyncpa [#allocation3], 0  ;;  %94 = vperm.xlu1 %620, %v29_v1   ;;  %140 = vperm.xlu0 %625, %v28_v4   ;;  %v27_v6 = vld [vmem:[%s848_s1] sm:$0xff]  ;;  %v33_v7 = vld [vmem:[%s849_s2 + $0x10] sm:$0xff]  ;;  %v703_v20 = vmov 0.0   ;;  %v59_v23 = vlaneseq  ;;  %vm249_vm0 = vcmask 261120  }
   0x8   :  { %v228_v8 = vld [vmem:[%s851_s4 + $0x18] sm:$0xff]  ;;  %v226_v9 = vld [vmem:[%s851_s4 + $0x8] sm:$0xff]  ;;  %v36_v14 = vld [vmem:[%s853_s6] sm:$0x7]  ;;  %326 = vmatprep.mubr.f32.mxu0 %v703_v20  ;;  %465 = vmatprep.mubr.f32.mxu1 %v703_v20  ;;  %s704_s25 = smov [#allocation2]  }
   0x9   :  { %v34_v10 = vld [vmem:[%s849_s2 + $0x18] sm:$0xff]  ;;  %v605_v12 = vld [vmem:[%s851_s4 + $0x28] sm:$0xff]  ;;  %v31_v15 = vld [vmem:[%s849_s2] sm:$0xff]  ;;  %v60_v25 = vshrl.u32 %v59_v23, 7  ;;  %s588_s26 = sshll.u32 %s704_s25, 4  ;;  %s589_s26 = int_to_ptr.vmem [resolvable:$true] %s588_s26 }
   0xa   :  { %v607_v11 = vld [vmem:[%s851_s4 + $0x38] sm:$0xff]  ;;  %v32_v13 = vld [vmem:[%s849_s2 + $0x8] sm:$0xff]  ;;  %v227_v16 = vld [vmem:[%s851_s4 + $0x10] sm:$0xff]  ;;  %s678_s27 = scalar_lea.vmem %s589_s26, 128  ;;  %p683_p1 = scmp.lt.s32.totalorder %s589_s26, %s589_s26 }
   0xb   :  { %621 = vset.pattern.permute.xlu1 %v702_v5  ;;  %626 = vset.pattern.permute.xlu0 %v701_v3  ;;  %v225_v17 = vld [vmem:[%s851_s4] sm:$0xff]  ;;  %v606_v18 = vld [vmem:[%s851_s4 + $0x30] sm:$0xff]  ;;  %v107_v27 = vsub.s32 5, %v60_v25  ;;  %v61_v29 = vsub.s32 0, %v60_v25  ;;  %v65_v30 = vsub.s32 4, %v60_v25  ;;  %v103_v31 = vsub.s32 1, %v60_v25  ;;  %p679_p0 = scmp.ne.s32.totalorder %s589_s26, %s678_s27  ;;  %p684_p2 = scmp.lt.s32.totalorder %s678_s27, %s678_s27 }
   0xc   :  { %148 = vperm.xlu1 %621, %v30_v0   ;;  %55 = vperm.xlu0 %626, %v30_v0   ;;  %v604_v19 = vld [vmem:[%s851_s4 + $0x20] sm:$0xff]  ;;  %v157_v35 = vsub.s32 6, %v60_v25  ;;  %v153_v39 = vsub.s32 2, %v60_v25 }
   0xd   :  { %v37_v32 = vld [vmem:[%s847_s0] sm:$0x77]  ;;  %p685_p3 = por %p684_p2, %p683_p1 }
   0xe   :  { %v108_v34 = vrot.slane %v37_v32, %v107_v27  ;;  %v62_v36 = vrot.slane %v37_v32, %v61_v29  ;;  %v66_v37 = vrot.slane %v37_v32, %v65_v30  ;;  %v104_v38 = vrot.slane %v37_v32, %v103_v31 }
   0xf   :  { %v158_v42 = vrot.slane %v37_v32, %v157_v35  ;;  %v154_v46 = vrot.slane %v37_v32, %v153_v39  ;;  %p686_p4 = pnand %p685_p3, %p679_p0 }
  0x10   :  { %622 = vset.pattern.permute.xlu1 %v700_v2  ;;  %45 = vperm.xlu0 %626, %v28_v4   ;;  %v118_v41 = vrot.slane %v108_v34, %v103_v31  ;;  %v72_v43 = vrot.slane %v62_v36, %v61_v29  ;;  %v76_v44 = vrot.slane %v66_v37, %v61_v29 }
  0x11   :  { %90 = vperm.xlu1 %622, %v28_v4   ;;  %v114_v45 = vrot.slane %v104_v38, %v103_v31  ;;  %v168_v54 = vrot.slane %v158_v42, %v153_v39  ;;  %v164_v56 = vrot.slane %v154_v46, %v153_v39 }
  0x14   :  { %40 = vperm.xlu0 %626, %v27_v6  }
  0x15   :  { %623 = vset.pattern.permute.xlu1 %v702_v5 }
  0x16   :  { %144 = vperm.xlu1 %623, %v29_v1  }
  0x18   :  { %197 = vperm.xlu0 %626, %v33_v7  }
  0x1a   :  { %624 = vset.pattern.permute.xlu1 %v700_v2 }
  0x1b   :  { %86 = vperm.xlu1 %624, %v27_v6  }
  0x1c   :  { %246 = vperm.xlu0 %626, %v228_v8  }
  0x1f   :  { %627 = vset.pattern.permute.xlu1 %v701_v3 }
  0x20   :  { %236 = vperm.xlu0 %626, %v226_v9   ;;  %202 = vperm.xlu1 %627, %v34_v10  }
  0x24   :  { %386 = vperm.xlu0 %626, %v607_v11   ;;  %628 = vset.pattern.permute.xlu1 %v702_v5 }
  0x25   :  { %136 = vperm.xlu1 %628, %v27_v6  }
  0x28   :  { %376 = vperm.xlu0 %626, %v605_v12  }
  0x29   :  { %629 = vset.pattern.permute.xlu1 %v701_v3 }
  0x2a   :  { %192 = vperm.xlu1 %629, %v32_v13  }
  0x2c   :  { %500 = vperm.xlu0 %626, %v36_v14  }
  0x2e   :  { %187 = vperm.xlu1 %629, %v31_v15  }
  0x32   :  { %241 = vperm.xlu1 %629, %v227_v16  }
  0x36   :  { %231 = vperm.xlu1 %629, %v225_v17  }
  0x3a   :  { %381 = vperm.xlu1 %629, %v606_v18  }
  0x3e   :  { %371 = vperm.xlu1 %629, %v604_v19  }
  0x7d   :  { %v51_v21 = vpop.permute.xlu1 %50  ;;  %v99_v22 = vpop.permute.xlu0 %98 }
  0x7e   :  { %v125_v49 = vmul.f32 %v114_v45, %v99_v22  ;;  %v126_v50 = vmul.f32 %v118_v41, %v99_v22  ;;  %v82_v57 = vmul.f32 %v76_v44, %v51_v21  ;;  %v81_v59 = vmul.f32 %v72_v43, %v51_v21 }
  0x82   :  { %v95_v24 = vpop.permute.xlu1 %94  ;;  %v141_v26 = vpop.permute.xlu0 %140 }
  0x83   :  { %v124_v53 = vmul.f32 %v118_v41, %v95_v24  ;;  %v123_v55 = vmul.f32 %v114_v45, %v95_v24  ;;  %v171_v19 = vmul.f32 %v164_v56, %v141_v26  ;;  %v172_v21 = vmul.f32 %v168_v54, %v141_v26 }
  0x85   :  { %v132_v1 = vadd.f32 %v124_v53, %v82_v57  ;;  %v131_v2 = vadd.f32 %v123_v55, %v81_v59  ;;  %v223_v53 = vld [vmem:[%s850_s3 + $0x10] sm:$0xff] }
  0x87   :  { %v149_v28 = vpop.permute.xlu1 %148  ;;  %v56_v33 = vpop.permute.xlu0 %55 }
  0x88   :  { %v83_v51 = vmul.f32 %v72_v43, %v56_v33  ;;  %v84_v52 = vmul.f32 %v76_v44, %v56_v33  ;;  %v175_v3 = vmul.f32 %v164_v56, %v149_v28  ;;  %v176_v4 = vmul.f32 %v168_v54, %v149_v28 }
  0x8a   :  { %v133_v60 = vadd.f32 %v125_v49, %v83_v51  ;;  %v134_v61 = vadd.f32 %v126_v50, %v84_v52  ;;  %v221_v51 = vld [vmem:[%s850_s3] sm:$0xff]  ;;  %v222_v52 = vld [vmem:[%s850_s3 + $0x8] sm:$0xff] }
  0x8b   :  { %v46_v47 = vpop.permute.xlu0 %45 }
  0x8c   :  { %v91_v40 = vpop.permute.xlu1 %90  ;;  %v183_v7 = vadd.f32 %v175_v3, %v133_v60  ;;  %v184_v8 = vadd.f32 %v176_v4, %v134_v61  ;;  %v79_v9 = vmul.f32 %v72_v43, %v46_v47  ;;  %v80_v10 = vmul.f32 %v76_v44, %v46_v47 }
  0x8d   :  { %v121_v12 = vmul.f32 %v114_v45, %v91_v40  ;;  %v122_v13 = vmul.f32 %v118_v41, %v91_v40 }
  0x8f   :  { %v41_v62 = vpop.permute.xlu0 %40  ;;  %v129_v22 = vadd.f32 %v121_v12, %v79_v9  ;;  %v130_v23 = vadd.f32 %v122_v13, %v80_v10 }
  0x90   :  { %v77_v25 = vmul.f32 %v72_v43, %v41_v62  ;;  %v78_v27 = vmul.f32 %v76_v44, %v41_v62 }
  0x91   :  { %v145_v48 = vpop.permute.xlu1 %144  ;;  %v179_v32 = vadd.f32 %v171_v19, %v129_v22  ;;  %v180_v33 = vadd.f32 %v172_v21, %v130_v23  ;;  %v601_v21 = vld [vmem:[%s850_s3 + $0x28] sm:$0xff]  ;;  %v602_v22 = vld [vmem:[%s850_s3 + $0x30] sm:$0xff]  ;;  %v603_v23 = vld [vmem:[%s850_s3 + $0x38] sm:$0xff] }
  0x92   :  { %v174_v58 = vmul.f32 %v168_v54, %v145_v48  ;;  %v173_v63 = vmul.f32 %v164_v56, %v145_v48 }
  0x93   :  { %v198_v14 = vpop.permute.xlu0 %197 }
  0x94   :  { %v182_v5 = vadd.f32 %v174_v58, %v132_v1  ;;  %v181_v6 = vadd.f32 %v173_v63, %v131_v2 }
  0x96   :  { %v87_v0 = vpop.permute.xlu1 %86  ;;  %v210_v17 = vadd.f32 %v198_v14, %v182_v5  ;;  %v209_v18 = vadd.f32 %v198_v14, %v181_v6 }
  0x97   :  { %v119_v28 = vmul.f32 %v114_v45, %v87_v0  ;;  %v120_v29 = vmul.f32 %v118_v41, %v87_v0  ;;  %v247_v60 = vpop.permute.xlu0 %246 }
  0x99   :  { %v127_v35 = vadd.f32 %v119_v28, %v77_v25  ;;  %v128_v36 = vadd.f32 %v120_v29, %v78_v27 }
  0x9b   :  { %v203_v11 = vpop.permute.xlu1 %202  ;;  %v237_v4 = vpop.permute.xlu0 %236 }
  0x9c   :  { %v211_v15 = vadd.f32 %v203_v11, %v183_v7  ;;  %v212_v16 = vadd.f32 %v203_v11, %v184_v8 }
  0x9e   :  { %630 = vtanh.f32 %v211_v15 }
  0x9f   :  { %632 = vtanh.f32 %v212_v16 }
  0xa0   :  { %v137_v24 = vpop.permute.xlu1 %136  ;;  %634 = vtanh.f32 %v210_v17 }
  0xa1   :  { %636 = vtanh.f32 %v209_v18  ;;  %v169_v30 = vmul.f32 %v164_v56, %v137_v24  ;;  %v170_v31 = vmul.f32 %v168_v54, %v137_v24  ;;  %v224_v54 = vld [vmem:[%s850_s3 + $0x18] sm:$0xff]  ;;  %v600_v18 = vld [vmem:[%s850_s3 + $0x20] sm:$0xff] }
  0xa3   :  { %v177_v26 = vadd.f32 %v169_v30, %v127_v35  ;;  %v178_v39 = vadd.f32 %v170_v31, %v128_v36  ;;  %v387_v30 = vpop.permute.xlu0 %386 }
  0xa5   :  { %v193_v34 = vpop.permute.xlu1 %192 }
  0xa6   :  { %v207_v37 = vadd.f32 %v193_v34, %v179_v32  ;;  %v208_v38 = vadd.f32 %v193_v34, %v180_v33 }
  0xa8   :  { %638 = vtanh.f32 %v207_v37 }
  0xa9   :  { %640 = vtanh.f32 %v208_v38  ;;  %v188_v40 = vpop.permute.xlu1 %187 }
  0xaa   :  { %v205_v42 = vadd.f32 %v188_v40, %v177_v26  ;;  %v206_v43 = vadd.f32 %v188_v40, %v178_v39 }
  0xab   :  { %v631_v44 = vpop.eup %630 }
  0xac   :  { %v633_v46 = vpop.eup %632  ;;  %642 = vtanh.f32 %v205_v42 }
  0xad   :  { %644 = vtanh.f32 %v206_v43  ;;  %286 = vmatprep.subr.mxu0 %v633_v46  ;;  %v635_v41 = vpop.eup %634  ;;  %v242_v62 = vpop.permute.xlu1 %241 }
  0xae   :  { %287 = vmatpush1.msra.mxu0 %v631_v44  ;;  %v637_v45 = vpop.eup %636 }
  0xaf   :  { %288 = vmatprep.subr.mxu0 %v635_v41 }
  0xb0   :  { %289 = vmatpush1.msra.mxu0 %v637_v45 }
  0xb1   :  { %v232_v7 = vpop.permute.xlu1 %231 }
  0xb5   :  { %v639_v47 = vpop.eup %638  ;;  %v382_v32 = vpop.permute.xlu1 %381 }
  0xb6   :  { %v641_v48 = vpop.eup %640 }
  0xb7   :  { %290 = vmatprep.subr.mxu0 %v641_v48 }
  0xb8   :  { %291 = vmatpush1.msra.mxu0 %v639_v47 }
  0xb9   :  { %v643_v49 = vpop.eup %642  ;;  %v372_v39 = vpop.permute.xlu1 %371 }
  0xba   :  { %v645_v50 = vpop.eup %644 }
  0xbb   :  { %292 = vmatprep.subr.mxu0 %v645_v50  ;;  %v35_v50 = vld [vmem:[%s852_s5] sm:$0x7] }
  0xbc   :  { %293 = vmatpush1.msra.mxu0 %v643_v49 }
  0xbd   :  { %596 = vmatmul.mubr.msk.f32.vlgmr.msra.gmra.mxu0 %vm249_vm0, %v221_v51 }
  0xbe   :  { %332 = vmatprep.mubr.f32.mxu0 %v703_v20 }
  0xc1   :  { %597 = vmatmul.mubr.msk.f32.gmra.mxu0 %vm249_vm0, %v222_v52 }
  0xc2   :  { %338 = vmatprep.mubr.f32.mxu0 %v703_v20 }
  0xc5   :  { %598 = vmatmul.mubr.msk.f32.gmra.mxu0 %vm249_vm0, %v223_v53 }
  0xc6   :  { %344 = vmatprep.mubr.f32.mxu0 %v703_v20 }
  0xc9   :  { %599 = vmatmul.mubr.msk.f32.gmra.mxu0 %vm249_vm0, %v224_v54 }
  0xca   :  { %570 = vmatprep.mubr.f32.mxu0 %v703_v20 }
 0x17d   :  { %v328_v55 = vpop.f32.mrf.mxu0 }
 0x17e   :  { %v329_v10 = vadd.f32 %v328_v55, %v232_v7 }
 0x17f   :  { %v330_v56 = vpop.f32.mrf.mxu0 }
 0x180   :  { %v331_v9 = vadd.f32 %v330_v56, %v232_v7 }
 0x181   :  { %v334_v57 = vpop.f32.mrf.mxu0 }
 0x182   :  { %v335_v8 = vadd.f32 %v334_v57, %v237_v4 }
 0x183   :  { %v336_v58 = vpop.f32.mrf.mxu0 }
 0x184   :  { %v337_v6 = vadd.f32 %v336_v58, %v237_v4 }
 0x185   :  { %v340_v59 = vpop.f32.mrf.mxu0 }
 0x186   :  { %v341_v5 = vadd.f32 %v340_v59, %v242_v62 }
 0x187   :  { %v342_v61 = vpop.f32.mrf.mxu0 }
 0x188   :  { %v343_v2 = vadd.f32 %v342_v61, %v242_v62 }
 0x189   :  { %v346_v63 = vpop.f32.mrf.mxu0 }
 0x18a   :  { %v347_v0 = vadd.f32 %v346_v63, %v247_v60 }
 0x18b   :  { %v348_v1 = vpop.f32.mrf.mxu0 }
 0x18c   :  { %v349_v3 = vadd.f32 %v348_v1, %v247_v60 }
 0x18e   :  { %646 = vtanh.f32 %v349_v3 }
 0x18f   :  { %648 = vtanh.f32 %v347_v0 }
 0x190   :  { %650 = vtanh.f32 %v343_v2 }
 0x191   :  { %652 = vtanh.f32 %v341_v5 }
 0x192   :  { %654 = vtanh.f32 %v337_v6 }
 0x193   :  { %656 = vtanh.f32 %v335_v8 }
 0x194   :  { %658 = vtanh.f32 %v331_v9 }
 0x195   :  { %660 = vtanh.f32 %v329_v10 }
 0x19b   :  { %v647_v11 = vpop.eup %646 }
 0x19c   :  { %v649_v12 = vpop.eup %648  ;;  %425 = vmatprep.subr.mxu1 %v647_v11 }
 0x19d   :  { %v651_v13 = vpop.eup %650  ;;  %426 = vmatpush1.msra.mxu1 %v649_v12 }
 0x19e   :  { %v653_v14 = vpop.eup %652  ;;  %427 = vmatprep.subr.mxu1 %v651_v13 }
 0x19f   :  { %v655_v15 = vpop.eup %654  ;;  %428 = vmatpush1.msra.mxu1 %v653_v14 }
 0x1a0   :  { %v657_v16 = vpop.eup %656  ;;  %429 = vmatprep.subr.mxu1 %v655_v15 }
 0x1a1   :  { %v659_v17 = vpop.eup %658  ;;  %430 = vmatpush1.msra.mxu1 %v657_v16 }
 0x1a2   :  { %v661_v19 = vpop.eup %660  ;;  %431 = vmatprep.subr.mxu1 %v659_v17 }
 0x1a3   :  { %432 = vmatpush1.msra.mxu1 %v661_v19 }
 0x1a4   :  { %608 = vmatmul.mubr.msk.f32.vlgmr.msra.gmra.mxu1 %vm249_vm0, %v600_v18 }
 0x1a5   :  { %471 = vmatprep.mubr.f32.mxu1 %v703_v20 }
 0x1a8   :  { %609 = vmatmul.mubr.msk.f32.gmra.mxu1 %vm249_vm0, %v601_v21 }
 0x1a9   :  { %477 = vmatprep.mubr.f32.mxu1 %v703_v20 }
 0x1ac   :  { %610 = vmatmul.mubr.msk.f32.gmra.mxu1 %vm249_vm0, %v602_v22 }
 0x1ad   :  { %483 = vmatprep.mubr.f32.mxu1 %v703_v20  ;;  %v377_v20 = vpop.permute.xlu0 %376 }
 0x1b0   :  { %611 = vmatmul.mubr.msk.f32.gmra.mxu1 %vm249_vm0, %v603_v23 }
 0x1b1   :  { %v501_v53 = vpop.permute.xlu0 %500 }
 0x264   :  { %v467_v24 = vpop.f32.mrf.mxu1 }
 0x265   :  { %v468_v43 = vadd.f32 %v467_v24, %v372_v39 }
 0x266   :  { %v469_v25 = vpop.f32.mrf.mxu1 }
 0x267   :  { %v470_v42 = vadd.f32 %v469_v25, %v372_v39 }
 0x268   :  { %v473_v27 = vpop.f32.mrf.mxu1 }
 0x269   :  { %v474_v40 = vadd.f32 %v473_v27, %v377_v20 }
 0x26a   :  { %v475_v28 = vpop.f32.mrf.mxu1 }
 0x26b   :  { %v476_v26 = vadd.f32 %v475_v28, %v377_v20 }
 0x26c   :  { %v479_v29 = vpop.f32.mrf.mxu1 }
 0x26d   :  { %v480_v38 = vadd.f32 %v479_v29, %v382_v32 }
 0x26e   :  { %v481_v31 = vpop.f32.mrf.mxu1 }
 0x26f   :  { %v482_v36 = vadd.f32 %v481_v31, %v382_v32 }
 0x270   :  { %v485_v33 = vpop.f32.mrf.mxu1 }
 0x271   :  { %v486_v34 = vadd.f32 %v485_v33, %v387_v30 }
 0x272   :  { %v487_v35 = vpop.f32.mrf.mxu1 }
 0x273   :  { %v488_v37 = vadd.f32 %v487_v35, %v387_v30 }
 0x275   :  { %662 = vtanh.f32 %v488_v37 }
 0x276   :  { %664 = vtanh.f32 %v486_v34 }
 0x277   :  { %666 = vtanh.f32 %v482_v36 }
 0x278   :  { %668 = vtanh.f32 %v480_v38 }
 0x279   :  { %670 = vtanh.f32 %v476_v26 }
 0x27a   :  { %672 = vtanh.f32 %v474_v40 }
 0x27b   :  { %674 = vtanh.f32 %v470_v42 }
 0x27c   :  { %676 = vtanh.f32 %v468_v43 }
 0x282   :  { %v663_v44 = vpop.eup %662 }
 0x283   :  { %v665_v46 = vpop.eup %664  ;;  %530 = vmatprep.subr.mxu0 %v663_v44 }
 0x284   :  { %v667_v41 = vpop.eup %666  ;;  %531 = vmatpush1.msra.mxu0 %v665_v46 }
 0x285   :  { %v669_v45 = vpop.eup %668  ;;  %532 = vmatprep.subr.mxu0 %v667_v41 }
 0x286   :  { %v671_v47 = vpop.eup %670  ;;  %533 = vmatpush1.msra.mxu0 %v669_v45 }
 0x287   :  { %v673_v48 = vpop.eup %672  ;;  %534 = vmatprep.subr.mxu0 %v671_v47 }
 0x288   :  { %v675_v49 = vpop.eup %674  ;;  %535 = vmatpush1.msra.mxu0 %v673_v48 }
 0x289   :  { %v677_v51 = vpop.eup %676  ;;  %536 = vmatprep.subr.mxu0 %v675_v49 }
 0x28a   :  { %537 = vmatpush1.msra.mxu0 %v677_v51 }
 0x28b   :  { %612 = vmatmul.mubr.msk.f32.vlgmr.msra.gmra.mxu0 %vm249_vm0, %v35_v50 }
 0x34b   :  { %v572_v52 = vpop.f32.mrf.mxu0 }
 0x34c   :  { %v573_v55 = vadd.f32 %v572_v52, %v501_v53 }
 0x34d   :  { %v574_v54 = vpop.f32.mrf.mxu0 }
 0x34e   :  { %v575_v56 = vadd.f32 %v574_v54, %v501_v53 }
 0x350   :  { %v579_v57 = vcombine.low %v573_v55, %v575_v56 }
 0x352   :  { %581 = vst [vmem:[#allocation2] sm:$0x77] %v579_v57 }
 0x353   :  { %689 = shalt.err (!%p686_p4)
}
 0x354   :  { %591 = dma.vmem_to_hbm [thread:$0]  %s589_s26, 128, %s854_s7, [#allocation3]  }
 0x355   :  { %698 = dma.done.wait [#allocation3], 128  }
 0x356   :  { %699 = vsyncadd [#allocation3], 4294967168 }
 0x357   :  { %595 = vsyncpa [#allocation3], 1 }

</bundles_post_ra>
